<compile_context>
chip_gen: v5e
topology: v5e:2x2
jax: 0.10.0
libtpu: 0.0.40
codegen_flags: <defaults>
</compile_context>

<pallas_src>
import functools

import jax
import jax.numpy as jnp
from jax.experimental import pallas as pl
from jax.experimental.pallas import tpu as pltpu


def _round_up(x, m):
    return ((x + m - 1) // m) * m


def _linreg_kernel(x_ref, w_ref, b_ref, o_ref):
    # x_ref: (TM, D) VMEM tile of X
    # w_ref: (1, D)  VMEM lane-dense weight row (resident across grid steps)
    # b_ref: (1,)    SMEM scalar bias
    # o_ref: (TM, 1) VMEM output tile
    x = x_ref[...]
    w_row = w_ref[...]                                   # (1, D), broadcast over rows
    acc = jnp.sum(x * w_row, axis=-1, keepdims=True)     # (TM, 1), VPU mul + XLU reduce
    o_ref[...] = (acc + b_ref[0]).astype(o_ref.dtype)


@functools.partial(jax.jit, static_argnames=("block_rows", "min_pallas_rows"))
def linear_regression_forward(x, w, b, *, block_rows=None, min_pallas_rows=0):
    """Forward pass of LinearRegressionScratch on TPU via Pallas.

    x: (N, num_inputs) float32
    w: (num_inputs, 1) float32
    b: (1,) float32
    returns: (N, 1) float32
    """
    n, d = x.shape

    # Tiny problems are dominated by kernel launch overhead; let XLA fuse them.
    if n < min_pallas_rows:
        return jnp.matmul(x, w) + b

    w_row = w.reshape(1, d)   # lane-dense weight row
    b1 = b.reshape(1)         # scalar bias for SMEM

    # --- Row-tile sizing -------------------------------------------------
    # Per-buffer VMEM footprint per row (f32):
    #   X tile row : round_up(D, 128) lanes * 4 B   (lane padding when D < 128)
    #   out column : one (8,128) tile per 8 rows -> 512 B/row
    # Double buffering doubles both.  Budget ~8 MiB per buffer set
    # (=> ~16 MiB total, safely under the 32 MiB scoped-VMEM limit we request,
    #  which itself is safe on v5e/v6e/v7x).
    d_pad = _round_up(d, 128)
    per_row_bytes = (d_pad + 128) * 4
    budget_per_buffer = 8 * 1024 * 1024
    auto_tm = max(8, (budget_per_buffer // per_row_bytes) // 8 * 8)

    tm = auto_tm if block_rows is None else max(8, _round_up(block_rows, 8))
    tm = min(tm, _round_up(n, 8))   # never exceed the (padded) batch itself
    tm = max(8, _round_up(tm, 8))

    # Pad N up to a multiple of the tile so every block is full (pad rows = 0,
    # sliced off at the end).
    n_pad = _round_up(n, tm)
    if n_pad != n:
        x = jnp.pad(x, ((0, n_pad - n), (0, 0)))

    grid = (n_pad // tm,)

    out = pl.pallas_call(
        _linreg_kernel,
        out_shape=jax.ShapeDtypeStruct((n_pad, 1), x.dtype),
        grid=grid,
        in_specs=[
            pl.BlockSpec((tm, d), lambda i: (i, 0)),                   # X row tiles
            pl.BlockSpec((1, d), lambda i: (0, 0)),                    # w row (resident)
            pl.BlockSpec(memory_space=pltpu.MemorySpace.SMEM),         # bias scalar
        ],
        out_specs=pl.BlockSpec((tm, 1), lambda i: (i, 0)),
        compiler_params=pltpu.CompilerParams(
            dimension_semantics=("parallel",),
            vmem_limit_bytes=32 * 1024 * 1024,
        ),
    )(x, w_row, b1)

    return out[:n]


if __name__ == "__main__":
    key = jax.random.PRNGKey(0)
    k_x, k_w = jax.random.split(key)

    batch = 8
    num_inputs = 32
    sigma = 0.01

    # Deterministic parameter init mirroring the module's __init__:
    #   w ~ Normal(0, sigma) of shape (num_inputs, 1), b = zeros(1)
    w = sigma * jax.random.normal(k_w, (num_inputs, 1), dtype=jnp.float32)
    b = jnp.zeros((1,), dtype=jnp.float32)

    x = jax.random.normal(k_x, (batch, num_inputs), dtype=jnp.float32)

    # Small-batch path (single tile, auto-sized).
    y_hat = linear_regression_forward(x, w, b)
    y_hat = jax.block_until_ready(y_hat)

    # Reference check in plain JAX.
    y_ref = jnp.matmul(x, w) + b
    assert y_hat.shape == (batch, 1)
    assert jnp.allclose(y_hat, y_ref, atol=1e-5, rtol=1e-5)

    # Larger, non-tile-multiple batch with an explicit small tile to exercise
    # multi-step tiling + the zero-padding path (tm=512 -> 4 grid steps).
    k_big = jax.random.PRNGKey(1)
    x_big = jax.random.normal(k_big, (1537, num_inputs), dtype=jnp.float32)
    y_big = jax.block_until_ready(
        linear_regression_forward(x_big, w, b, block_rows=512)
    )
    y_big_ref = jnp.matmul(x_big, w) + b
    assert y_big.shape == (1537, 1)
    assert jnp.allclose(y_big, y_big_ref, atol=1e-5, rtol=1e-5)

    # Same large batch on the auto-sized (single big tile) path.
    y_big2 = jax.block_until_ready(linear_regression_forward(x_big, w, b))
    assert jnp.allclose(y_big2, y_big_ref, atol=1e-5, rtol=1e-5)

    print("KERNEL_OK")
</pallas_src>

<mosaic_0001>
module attributes {stable_mosaic.version = 11 : i64} {
  func.func @_linreg_kernel(%arg0: i32, %arg1: memref<8x32xf32, #tpu.memory_space<vmem>>, %arg2: memref<1x32xf32, #tpu.memory_space<vmem>>, %arg3: memref<1xf32, #tpu.memory_space<smem>>, %arg4: memref<8x1xf32, #tpu.memory_space<vmem>>) attributes {dimension_semantics = [#tpu.dimension_semantics<parallel>], iteration_bounds = array<i64: 1>, scalar_prefetch = 0 : i64, scratch_operands = 0 : i64, tpu.core_type = #tpu.core_type<tc>, window_params = [{transform_indices = @transform_0, window_bounds = array<i64: 8, 32>}, {pipeline_mode = #tpu.pipeline_mode<synchronous>, transform_indices = @transform_1, window_bounds = array<i64: 1, 32>}, {transform_indices = @transform_2, window_bounds = array<i64: 1>}, {transform_indices = @transform_3, window_bounds = array<i64: 8, 1>}]} {
    %c0 = arith.constant 0 : index
    %c0_0 = arith.constant 0 : index
    %0 = vector.load %arg1[%c0, %c0_0] : memref<8x32xf32, #tpu.memory_space<vmem>>, vector<8x32xf32>
    %c0_1 = arith.constant 0 : index
    %c0_2 = arith.constant 0 : index
    %1 = vector.load %arg2[%c0_1, %c0_2] : memref<1x32xf32, #tpu.memory_space<vmem>>, vector<1x32xf32>
    %2 = vector.broadcast %1 : vector<1x32xf32> to vector<8x32xf32>
    %3 = arith.mulf %0, %2 : vector<8x32xf32>
    %cst = arith.constant dense<0.000000e+00> : vector<8xf32>
    %4 = vector.multi_reduction <add>, %3, %cst [1] : vector<8x32xf32> to vector<8xf32>
    %5 = vector.shape_cast %4 : vector<8xf32> to vector<8x1xf32>
    %c0_3 = arith.constant 0 : index
    %6 = memref.load %arg3[%c0_3] : memref<1xf32, #tpu.memory_space<smem>>
    %7 = vector.broadcast %6 : f32 to vector<8x1xf32>
    %8 = arith.addf %5, %7 : vector<8x1xf32>
    %c0_4 = arith.constant 0 : index
    %c0_5 = arith.constant 0 : index
    %9 = vector.load %arg4[%c0_4, %c0_5] : memref<8x1xf32, #tpu.memory_space<vmem>>, vector<8x1xf32>
    tpu.vector_store %arg4[%c0_4, %c0_5], %8 {strides = array<i32>} : memref<8x1xf32, #tpu.memory_space<vmem>>, vector<8x1xf32>,
    return
  }
  func.func @transform_0(%arg0: i32) -> (i32, i32) {
    %c0_i32 = arith.constant 0 : i32
    %c0_i32_0 = arith.constant 0 : i32
    return %arg0, %c0_i32 : i32, i32
  }
  func.func @transform_1(%arg0: i32) -> (i32, i32) {
    %c0_i32 = arith.constant 0 : i32
    %c0_i32_0 = arith.constant 0 : i32
    %c0_i32_1 = arith.constant 0 : i32
    return %c0_i32, %c0_i32_0 : i32, i32
  }
  func.func @transform_2(%arg0: i32) -> i32 {
    %c0_i32 = arith.constant 0 : i32
    %c0_i32_0 = arith.constant 0 : i32
    return %c0_i32 : i32
  }
  func.func @transform_3(%arg0: i32) -> (i32, i32) {
    %c0_i32 = arith.constant 0 : i32
    %c0_i32_0 = arith.constant 0 : i32
    return %arg0, %c0_i32 : i32, i32
  }
}

</mosaic_0001>

<bundles_post_ra>
// kernel: linear_regression_forward.1
= control target key start
LH: loop header
LB: loop body
LE: loop exit
PB: predicated region body
PF: predicated region fallthrough
CT: control target
= control target key end

     0   :  { %9 = vsyncpa [#allocation4], 0  ;;  %s77_s15 = smov [#allocation3]   ;;  %s110_s0 = inlined_call_operand.hbm [shape: f32[8,32], index: 0, kind: input, shape index: {}]   ;;  %s111_s1 = inlined_call_operand.vmem [shape: f32[1,32], index: 1, kind: input, shape index: {}]   ;;  %s112_s2 = inlined_call_operand.<no memory space> [shape: f32[1], index: 2, kind: input, shape index: {}]   ;;  %s113_s3 = inlined_call_operand.vmem [shape: f32[8,1], index: 3, kind: output, shape index: {}]  }
   0x1   :  { %s15_s14 = sshll.u32 %s110_s0, 4  ;;  %s17_s16 = sshll.u32 %s77_s15, 4  ;;  %s16_s14 = int_to_ptr.hbm [resolvable:$true] %s15_s14  ;;  %s18_s16 = int_to_ptr.vmem [resolvable:$true] %s17_s16 }
   0x2   :  { %20 = dma.hbm_to_vmem [thread:$0]  %s16_s14, 128, %s18_s16, [#allocation4]  }
   0x3   :  { %75 = dma.done.wait [#allocation4], 128  }
   0x4   :  { %76 = vsyncadd [#allocation4], 4294967168  ;;  %v29_v0 = vld [vmem:[#allocation3] sm:$0xff]  ;;  %vm35_vm0 = vcmask 261120   ;;  %v40_v4 = vstv %s112_s2  ;;  %vm42_vm1 = vcmask 7168  }
   0x5   :  { %v50_v1 = vld [vmem:[%s111_s1] ss:$0 sm:$0xff] }
   0x6   :  { %v34_v2 = vmul.f32 %v50_v1, %v29_v0 }
   0x8   :  { %v36_v3 = vsel %vm35_vm0, %v34_v2, 0.0 }
   0x9   :  { %37 = vadd.xlane.f32.xlu0 %v36_v3 }
  0x7c   :  { %v38_v5 = vpop.xlane.xlu0 %37 }
  0x7d   :  { %v41_v6 = vadd.f32 %v40_v4, %v38_v5 }
  0x7f   :  { %43 = vst.msk [vmem:[%s113_s3] sm:$0xff] %vm42_vm1, %v41_v6 }
  0x80   :  { %48 = vsyncpa [#allocation4], 1 }

</bundles_post_ra>
